<compile_context>
chip_gen: v5e
topology: v5e:2x2
jax: 0.10.0
libtpu: 0.0.40
codegen_flags: <defaults>
</compile_context>

<pallas_src>
import functools

import jax
import jax.numpy as jnp
from jax.experimental import pallas as pl
from jax.experimental.pallas import tpu as pltpu


def _round_up(x: int, m: int) -> int:
    return ((x + m - 1) // m) * m


def _choose_batch_tile(batch, n_input, n_out_pad, in_itemsize, out_itemsize,
                       budget_bytes=24 * 1024 * 1024):
    """Largest batch tile (multiple of 8) that keeps per-step VMEM bounded."""
    # Fused weights stay resident across the grid; count them 2x to be safe
    # w.r.t. double-buffering.
    w_bytes = 2 * n_input * (2 * n_out_pad) * in_itemsize
    tb = 512
    while tb > 8:
        per_step = (w_bytes
                    + 2 * tb * n_input * in_itemsize          # z tile (double-buffered)
                    + 2 * tb * 4                              # library tile
                    + 2 * 3 * tb * n_out_pad * out_itemsize   # three output tiles
                    + 3 * tb * n_out_pad * 4)                 # f32 intermediates (rough)
        if per_step <= budget_bytes:
            break
        tb //= 2
    return min(max(tb, 8), _round_up(batch, 8))


def _linear_decoder_kernel(z_ref, w_cat_ref, lib_ref,
                           scale_out_ref, rate_out_ref, drop_out_ref,
                           *, n_out_pad, n_out_real):
    # One fused MXU pass over [W_scale | W_dropout]; operands keep their input
    # dtype (bf16 feeds the MXU natively), accumulation in f32.
    fused = jnp.dot(z_ref[...], w_cat_ref[...],
                    preferred_element_type=jnp.float32)       # (TB, 2*n_out_pad)
    raw = fused[:, :n_out_pad]
    px_dropout = fused[:, n_out_pad:]

    # Mask any lane-padding on the gene axis out of the softmax reduction.
    if n_out_real != n_out_pad:
        col = jax.lax.broadcasted_iota(jnp.int32, raw.shape, 1)
        raw = jnp.where(col < n_out_real, raw, jnp.float32(-1e30))

    # Numerically-stable softmax over the gene axis (f32).
    m = jnp.max(raw, axis=-1, keepdims=True)
    e = jnp.exp(raw - m)
    denom = jnp.sum(e, axis=-1, keepdims=True)
    # EUP approx reciprocal (free slot) + one Newton step -> ~f32 accuracy.
    inv = pl.reciprocal(denom, approx=True)
    inv = inv * (2.0 - denom * inv)
    px_scale = e * inv

    # exp(library) computed once per (TB, 1) tile, broadcast over genes.
    px_rate = jnp.exp(lib_ref[...].astype(jnp.float32)) * px_scale

    scale_out_ref[...] = px_scale.astype(scale_out_ref.dtype)
    rate_out_ref[...] = px_rate.astype(rate_out_ref.dtype)
    drop_out_ref[...] = px_dropout.astype(drop_out_ref.dtype)


def linear_decoder_forward(dispersion, z, library, w_scale, w_dropout):
    """Pallas equivalent of LinearDecoder.forward.

    Args:
      dispersion: unused (kept for API parity with the PyTorch module).
      z:         (batch, n_input) latent.
      library:   (batch, 1) log library size.
      w_scale:   (n_input, n_output) factor-loading weight (== torch weight.T).
      w_dropout: (n_input, n_output) dropout-decoder weight (== torch weight.T).

    Returns:
      (px_scale, px_r=None, px_rate, px_dropout)
    """
    del dispersion
    batch, n_input = z.shape
    n_output = w_scale.shape[1]
    out_dt = z.dtype

    # Lane-dense gene axis (multiple of 128) -> unmasked full-lane stores.
    n_out_pad = _round_up(n_output, 128)
    pad_o = n_out_pad - n_output
    # Fuse the two bias-free linear layers into a single weight matrix.
    w_cat = jnp.concatenate(
        [jnp.pad(w_scale, ((0, 0), (0, pad_o))),
         jnp.pad(w_dropout, ((0, 0), (0, pad_o)))], axis=1)   # (n_input, 2*n_out_pad)

    in_isz = jnp.dtype(z.dtype).itemsize
    out_isz = jnp.dtype(out_dt).itemsize
    tb = _choose_batch_tile(batch, n_input, n_out_pad, in_isz, out_isz)

    # Pad batch up to a multiple of the tile; padded rows are sliced off below.
    batch_pad = _round_up(batch, tb)
    if batch_pad != batch:
        z = jnp.pad(z, ((0, batch_pad - batch), (0, 0)))
        library = jnp.pad(library, ((0, batch_pad - batch), (0, 0)))

    grid = (batch_pad // tb,)
    kernel = functools.partial(_linear_decoder_kernel,
                               n_out_pad=n_out_pad, n_out_real=n_output)

    out_shapes = tuple(jax.ShapeDtypeStruct((batch_pad, n_out_pad), out_dt)
                       for _ in range(3))

    in_specs = [
        pl.BlockSpec((tb, n_input), lambda i: (i, 0)),              # z: batch-tiled
        pl.BlockSpec((n_input, 2 * n_out_pad), lambda i: (0, 0)),   # fused weights: resident
        pl.BlockSpec((tb, 1), lambda i: (i, 0)),                    # library: batch-tiled
    ]
    out_specs = tuple(pl.BlockSpec((tb, n_out_pad), lambda i: (i, 0))
                      for _ in range(3))

    px_scale, px_rate, px_dropout = pl.pallas_call(
        kernel,
        out_shape=out_shapes,
        grid=grid,
        in_specs=in_specs,
        out_specs=out_specs,
        compiler_params=pltpu.CompilerParams(
            dimension_semantics=("parallel",),        # batch rows are independent
            vmem_limit_bytes=64 * 1024 * 1024),
    )(z, w_cat, library)

    # Strip batch / gene padding.
    px_scale = px_scale[:batch, :n_output]
    px_rate = px_rate[:batch, :n_output]
    px_dropout = px_dropout[:batch, :n_output]
    px_r = None
    # TODO(synk): categorical covariates (n_cat_list) / batch-norm / layer-norm
    # branches of FCLayers are not modeled (module defaults disable them).
    return px_scale, px_r, px_rate, px_dropout


def _reference_forward(z, library, w_scale, w_dropout):
    raw = z.astype(jnp.float32) @ w_scale.astype(jnp.float32)
    px_scale = jax.nn.softmax(raw, axis=-1)
    px_dropout = z.astype(jnp.float32) @ w_dropout.astype(jnp.float32)
    px_rate = jnp.exp(library.astype(jnp.float32)) * px_scale
    return px_scale, px_rate, px_dropout


def _run_case(key, batch, n_input, n_output):
    kz, kl, kw1, kw2 = jax.random.split(key, 4)
    z = jax.random.normal(kz, (batch, n_input), dtype=jnp.float32)
    library = jax.random.normal(kl, (batch, 1), dtype=jnp.float32) * 0.5
    w_scale = jax.random.normal(kw1, (n_input, n_output), dtype=jnp.float32) / jnp.sqrt(n_input)
    w_dropout = jax.random.normal(kw2, (n_input, n_output), dtype=jnp.float32) / jnp.sqrt(n_input)

    px_scale, px_r, px_rate, px_dropout = linear_decoder_forward(
        "gene", z, library, w_scale, w_dropout)
    jax.block_until_ready((px_scale, px_rate, px_dropout))

    ref_scale, ref_rate, ref_dropout = _reference_forward(z, library, w_scale, w_dropout)
    assert px_r is None
    assert px_scale.shape == (batch, n_output)
    assert jnp.allclose(px_scale, ref_scale, atol=1e-5, rtol=1e-4)
    assert jnp.allclose(px_rate, ref_rate, atol=1e-5, rtol=1e-4)
    assert jnp.allclose(px_dropout, ref_dropout, atol=1e-5, rtol=1e-4)


if __name__ == "__main__":
    key = jax.random.PRNGKey(0)
    k1, k2 = jax.random.split(key)

    # Aligned small case: batch=8 latent=32 genes=128 (no padding path).
    _run_case(k1, batch=8, n_input=32, n_output=128)
    # Unaligned case exercising batch + gene padding / softmax masking.
    _run_case(k2, batch=5, n_input=32, n_output=120)

    print("KERNEL_OK")
</pallas_src>

<mosaic_0001>
module attributes {stable_mosaic.version = 11 : i64} {
  func.func @_linear_decoder_kernel(%arg0: i32, %arg1: memref<8x32xf32, #tpu.memory_space<vmem>>, %arg2: memref<32x256xf32, #tpu.memory_space<vmem>>, %arg3: memref<8x1xf32, #tpu.memory_space<vmem>>, %arg4: memref<8x128xf32, #tpu.memory_space<vmem>>, %arg5: memref<8x128xf32, #tpu.memory_space<vmem>>, %arg6: memref<8x128xf32, #tpu.memory_space<vmem>>) attributes {dimension_semantics = [#tpu.dimension_semantics<parallel>], iteration_bounds = array<i64: 1>, scalar_prefetch = 0 : i64, scratch_operands = 0 : i64, tpu.core_type = #tpu.core_type<tc>, window_params = [{transform_indices = @transform_0, window_bounds = array<i64: 8, 32>}, {pipeline_mode = #tpu.pipeline_mode<synchronous>, transform_indices = @transform_1, window_bounds = array<i64: 32, 256>}, {transform_indices = @transform_2, window_bounds = array<i64: 8, 1>}, {transform_indices = @transform_3, window_bounds = array<i64: 8, 128>}, {transform_indices = @transform_4, window_bounds = array<i64: 8, 128>}, {transform_indices = @transform_5, window_bounds = array<i64: 8, 128>}]} {
    %c0 = arith.constant 0 : index
    %c0_0 = arith.constant 0 : index
    %0 = vector.load %arg1[%c0, %c0_0] : memref<8x32xf32, #tpu.memory_space<vmem>>, vector<8x32xf32>
    %c0_1 = arith.constant 0 : index
    %c0_2 = arith.constant 0 : index
    %1 = vector.load %arg2[%c0_1, %c0_2] : memref<32x256xf32, #tpu.memory_space<vmem>>, vector<32x256xf32>
    %cst = arith.constant dense<0.000000e+00> : vector<8x256xf32>
    %2 = tpu.matmul %0, %1, %cst {dimension_numbers = #tpu.dot_dimension_numbers<[1], [0], [0], [1], [0, 0, 1, 1], [], []>} : vector<8x32xf32>, vector<32x256xf32>, vector<8x256xf32> -> vector<8x256xf32>
    %3 = vector.extract_strided_slice %2 {offsets = [0, 0], sizes = [8, 128], strides = [1, 1]} : vector<8x256xf32> to vector<8x128xf32>
    %4 = vector.extract_strided_slice %2 {offsets = [0, 128], sizes = [8, 128], strides = [1, 1]} : vector<8x256xf32> to vector<8x128xf32>
    %cst_3 = arith.constant dense<0xFF800000> : vector<8xf32>
    %5 = vector.multi_reduction <maximumf>, %3, %cst_3 [1] : vector<8x128xf32> to vector<8xf32>
    %6 = vector.shape_cast %5 : vector<8xf32> to vector<8x1xf32>
    %7 = vector.broadcast %6 : vector<8x1xf32> to vector<8x128xf32>
    %8 = arith.subf %3, %7 : vector<8x128xf32>
    %9 = math.exp %8 : vector<8x128xf32>
    %cst_4 = arith.constant dense<0.000000e+00> : vector<8xf32>
    %10 = vector.multi_reduction <add>, %9, %cst_4 [1] : vector<8x128xf32> to vector<8xf32>
    %11 = vector.shape_cast %10 : vector<8xf32> to vector<8x1xf32>
    %12 = tpu.reciprocal %11 {approx = true} : vector<8x1xf32> -> vector<8x1xf32>
    %13 = arith.mulf %11, %12 : vector<8x1xf32>
    %cst_5 = arith.constant 2.000000e+00 : f32
    %14 = vector.broadcast %cst_5 : f32 to vector<8x1xf32>
    %15 = arith.subf %14, %13 : vector<8x1xf32>
    %16 = arith.mulf %12, %15 : vector<8x1xf32>
    %17 = vector.broadcast %16 : vector<8x1xf32> to vector<8x128xf32>
    %18 = arith.mulf %9, %17 : vector<8x128xf32>
    %c0_6 = arith.constant 0 : index
    %c0_7 = arith.constant 0 : index
    %19 = vector.load %arg3[%c0_6, %c0_7] : memref<8x1xf32, #tpu.memory_space<vmem>>, vector<8x1xf32>
    %20 = math.exp %19 : vector<8x1xf32>
    %21 = vector.broadcast %20 : vector<8x1xf32> to vector<8x128xf32>
    %22 = arith.mulf %21, %18 : vector<8x128xf32>
    %c0_8 = arith.constant 0 : index
    %c0_9 = arith.constant 0 : index
    %23 = vector.load %arg4[%c0_8, %c0_9] : memref<8x128xf32, #tpu.memory_space<vmem>>, vector<8x128xf32>
    tpu.vector_store %arg4[%c0_8, %c0_9], %18 {strides = array<i32>} : memref<8x128xf32, #tpu.memory_space<vmem>>, vector<8x128xf32>,
    %c0_10 = arith.constant 0 : index
    %c0_11 = arith.constant 0 : index
    %24 = vector.load %arg5[%c0_10, %c0_11] : memref<8x128xf32, #tpu.memory_space<vmem>>, vector<8x128xf32>
    tpu.vector_store %arg5[%c0_10, %c0_11], %22 {strides = array<i32>} : memref<8x128xf32, #tpu.memory_space<vmem>>, vector<8x128xf32>,
    %c0_12 = arith.constant 0 : index
    %c0_13 = arith.constant 0 : index
    %25 = vector.load %arg6[%c0_12, %c0_13] : memref<8x128xf32, #tpu.memory_space<vmem>>, vector<8x128xf32>
    tpu.vector_store %arg6[%c0_12, %c0_13], %4 {strides = array<i32>} : memref<8x128xf32, #tpu.memory_space<vmem>>, vector<8x128xf32>,
    return
  }
  func.func @transform_0(%arg0: i32) -> (i32, i32) {
    %c0_i32 = arith.constant 0 : i32
    %c0_i32_0 = arith.constant 0 : i32
    return %arg0, %c0_i32 : i32, i32
  }
  func.func @transform_1(%arg0: i32) -> (i32, i32) {
    %c0_i32 = arith.constant 0 : i32
    %c0_i32_0 = arith.constant 0 : i32
    %c0_i32_1 = arith.constant 0 : i32
    return %c0_i32, %c0_i32_0 : i32, i32
  }
  func.func @transform_2(%arg0: i32) -> (i32, i32) {
    %c0_i32 = arith.constant 0 : i32
    %c0_i32_0 = arith.constant 0 : i32
    return %arg0, %c0_i32 : i32, i32
  }
  func.func @transform_3(%arg0: i32) -> (i32, i32) {
    %c0_i32 = arith.constant 0 : i32
    %c0_i32_0 = arith.constant 0 : i32
    return %arg0, %c0_i32 : i32, i32
  }
  func.func @transform_4(%arg0: i32) -> (i32, i32) {
    %c0_i32 = arith.constant 0 : i32
    %c0_i32_0 = arith.constant 0 : i32
    return %arg0, %c0_i32 : i32, i32
  }
  func.func @transform_5(%arg0: i32) -> (i32, i32) {
    %c0_i32 = arith.constant 0 : i32
    %c0_i32_0 = arith.constant 0 : i32
    return %arg0, %c0_i32 : i32, i32
  }
}

</mosaic_0001>

<bundles_post_ra>
// kernel: tpu_custom_call.1
= control target key start
LH: loop header
LB: loop body
LE: loop exit
PB: predicated region body
PF: predicated region fallthrough
CT: control target
= control target key end

     0   :  { %11 = vsyncpa [#allocation3], 0  ;;  %s336_s0 = inlined_call_operand.vmem [shape: f32[8,32], index: 0, kind: input, shape index: {}]   ;;  %s337_s1 = inlined_call_operand.hbm [shape: f32[32,256], index: 1, kind: input, shape index: {}]   ;;  %s338_s2 = inlined_call_operand.vmem [shape: f32[8,1], index: 2, kind: input, shape index: {}]   ;;  %s339_s3 = inlined_call_operand.hbm [shape: f32[8,128], index: 3, kind: output, shape index: {0}]   ;;  %s340_s4 = inlined_call_operand.hbm [shape: f32[8,128], index: 4, kind: output, shape index: {1}]   ;;  %s341_s5 = inlined_call_operand.hbm [shape: f32[8,128], index: 5, kind: output, shape index: {2}]  }
   0x1   :  { %12 = vsyncpa [#allocation4], 0 }
   0x2   :  { %13 = vsyncpa [#allocation7], 0  ;;  %s20_s20 = sshll.u32 %s337_s1, 4  ;;  %s279_s21 = smov [#allocation2]   ;;  %s21_s20 = int_to_ptr.hbm [resolvable:$true] %s20_s20 }
   0x3   :  { %s22_s22 = sshll.u32 %s279_s21, 4  ;;  %s280_s23 = smov 256   ;;  %s23_s22 = int_to_ptr.vmem [resolvable:$true] %s22_s22 }
   0x4   :  { %s281_s24 = smov 16  }
   0x5   :  { %28 = dma.hbm_to_vmem [thread:$0]  %s21_s20, 1024, %s23_s22, [#allocation3], %s280_s23, %s280_s23, %s281_s24  }
   0x6   :  { %273 = dma.done.wait [#allocation3], 1024  }
   0x7   :  { %274 = vsyncadd [#allocation3], 4294966272  ;;  %v42_v0 = vld [vmem:[#allocation2 + $0x30] sm:$0xff]  ;;  %v40_v1 = vld [vmem:[#allocation2 + $0x20] sm:$0xff]  ;;  %vm44_vm0 = vcmask 261120   ;;  %v282_v8 = vmov 0  }
   0x8   :  { %60 = vmatpush.msra.mxu0 %v42_v0  ;;  %v38_v2 = vld [vmem:[#allocation2 + $0x10] sm:$0xff]  ;;  %v36_v3 = vld [vmem:[#allocation2] sm:$0xff]  ;;  %v43_v6 = vld [vmem:[#allocation2 + $0x38] sm:$0xff]  ;;  %169 = vset.pattern.permute.xlu1 %v282_v8  ;;  %s119_s30 = sshll.u32 %s339_s3, 4  ;;  %s284_s6 = smov [#allocation6]   ;;  %s120_s30 = int_to_ptr.hbm [resolvable:$true] %s119_s30 }
   0x9   :  { %v35_v4 = vld [vmem:[%s336_s0] sm:$0xff]  ;;  %v41_v7 = vld [vmem:[#allocation2 + $0x28] sm:$0xff]  ;;  %80 = vmatpush.msra.mxu1 %v43_v6  ;;  %v39_v10 = vld [vmem:[#allocation2 + $0x18] sm:$0xff]  ;;  %170 = vset.pattern.permute.xlu0 %v282_v8  ;;  %s283_s0 = smov [#allocation5]   ;;  %s128_s7 = sshll.u32 %s284_s6, 4  ;;  %s129_s7 = int_to_ptr.vmem [resolvable:$true] %s128_s7 }
   0xa   :  { %61 = vmatpush.msra.mxu0 %v40_v1  ;;  %v100_v9 = vld [vmem:[%s338_s2] sm:$0xff]  ;;  %v37_v12 = vld [vmem:[#allocation2 + $0x8] sm:$0xff]  ;;  %s117_s2 = sshll.u32 %s283_s0, 4  ;;  %s130_s10 = sshll.u32 %s340_s4, 4  ;;  %s118_s2 = int_to_ptr.vmem [resolvable:$true] %s117_s2  ;;  %s131_s10 = int_to_ptr.hbm [resolvable:$true] %s130_s10 }
   0xb   :  { %v101_v11 = vmul.f32 1.442695, %v100_v9  ;;  %81 = vmatpush.msra.mxu1 %v41_v7  ;;  %s285_s11 = smov [#allocation8]   ;;  %s141_s15 = sshll.u32 %s341_s5, 4  ;;  %s142_s15 = int_to_ptr.hbm [resolvable:$true] %s141_s15 }
   0xc   :  { %62 = vmatpush.msra.mxu0 %v38_v2  ;;  %s139_s12 = sshll.u32 %s285_s11, 4  ;;  %s140_s12 = int_to_ptr.vmem [resolvable:$true] %s139_s12 }
   0xd   :  { %171 = vpow2.f32 %v101_v11  ;;  %82 = vmatpush.msra.mxu1 %v39_v10 }
   0xe   :  { %63 = vmatpush.msra.mxu0 %v36_v3 }
   0xf   :  { %160 = vmatmul.msk.f32.vlgmr.msra.gmra.mxu0 %vm44_vm0, %v35_v4  ;;  %83 = vmatpush.msra.mxu1 %v37_v12 }
  0x10   :  { %161 = vmatmul.msk.f32.vlgmr.msra.gmra.mxu1 %vm44_vm0, %v35_v4 }
  0x13   :  { %v172_v13 = vpop.eup %171 }
  0x14   :  { %105 = vperm.xlu1 %169, %v172_v13  }
  0x86   :  { %v106_v24 = vpop.permute.xlu1 %105 }
  0x8c   :  { %v65_v5 = vpop.f32.mrf.mxu0 }
  0x8d   :  { %88 = vmax.xlane.f32.xlu0 %v65_v5  ;;  %v85_v18 = vpop.f32.mrf.mxu1 }
  0x8e   :  { %111 = vst [vmem:[#allocation8] sm:$0xff] %v85_v18 }
 0x100   :  { %v89_v14 = vpop.xlane.xlu0 %88 }
 0x101   :  { %v90_v15 = vsub.f32 %v65_v5, %v89_v14 }
 0x103   :  { %v91_v16 = vmul.f32 1.442695, %v90_v15 }
 0x105   :  { %173 = vpow2.f32 %v91_v16 }
 0x10b   :  { %v174_v17 = vpop.eup %173 }
 0x10c   :  { %93 = vadd.xlane.f32.xlu0 %v174_v17 }
 0x17f   :  { %v94_v19 = vpop.xlane.xlu0 %93 }
 0x180   :  { %175 = vrcp.f32 %v94_v19 }
 0x186   :  { %v176_v20 = vpop.eup %175 }
 0x187   :  { %v96_v21 = vmul.f32 %v176_v20, %v94_v19 }
 0x189   :  { %v97_v22 = vsub.f32 2.0, %v96_v21 }
 0x18b   :  { %v98_v23 = vmul.f32 %v176_v20, %v97_v22 }
 0x18d   :  { %v99_v25 = vmul.f32 %v174_v17, %v98_v23 }
 0x18f   :  { %v108_v26 = vmul.f32 %v106_v24, %v99_v25  ;;  %109 = vst [vmem:[#allocation5] sm:$0xff] %v99_v25 }
 0x190   :  { %122 = dma.vmem_to_hbm [thread:$0]  %s118_s2, 128, %s120_s30, [#allocation4]  }
 0x191   :  { %110 = vst [vmem:[#allocation6] sm:$0xff] %v108_v26 }
 0x192   :  { %133 = dma.vmem_to_hbm [thread:$0]  %s129_s7, 128, %s131_s10, [#allocation7]  }
 0x193   :  { %144 = dma.vmem_to_hbm [thread:$0]  %s140_s12, 128, %s142_s15, [#allocation7]  }
 0x194   :  { %275 = dma.done.wait [#allocation4], 128  }
 0x195   :  { %276 = vsyncadd [#allocation4], 4294967168 }
 0x196   :  { %277 = dma.done.wait [#allocation7], 256  }
 0x197   :  { %278 = vsyncadd [#allocation7], 4294967040 }
 0x198   :  { %157 = vsyncpa [#allocation3], 1 }
 0x199   :  { %158 = vsyncpa [#allocation4], 1 }
 0x19a   :  { %159 = vsyncpa [#allocation7], 1 }

</bundles_post_ra>
